<compile_context>
chip_gen: v6e
topology: v6e:2x2x1
jax: 0.10.0
libtpu: 0.0.40
codegen_flags: <defaults>
</compile_context>

<pallas_src>
import jax
import jax.numpy as jnp
import numpy as np
from jax.experimental import pallas as pl
from jax.experimental.pallas import tpu as pltpu


def _make_gcn_kernel(num_layers, b_blk, n, mem):
    def kernel(adji_ref, x_ref, *refs):
        # refs layout: [w0, 2*b0, w1, 2*b1, ..., w_out, b_out, out_ref]
        layer_refs = refs[: 2 * num_layers]
        wout_ref, bout_ref, out_ref = refs[2 * num_layers:]

        adj_plus = adji_ref[...]          # (B_blk, N, N)  == adj + I
        g3d = x_ref[...]                  # (B_blk, N, D_in)
        bn = b_blk * n

        # denom = adj.sum(-1) + 1 == (adj + I).sum(-1); hoisted, exact recip.
        denom = jnp.sum(adj_plus, axis=-1, keepdims=True)       # (B_blk, N, 1)
        inv_denom = pl.reciprocal(denom.reshape(bn, 1))          # exact

        acc = None
        for l in range(num_layers):
            w = layer_refs[2 * l][...]        # (d_in_l, mem) -- pre-transposed
            b2 = layer_refs[2 * l + 1][...]   # (1, mem)      -- already 2*bias

            # (adj + I) @ g : batched MXU matmul.
            ax = jnp.einsum("bnm,bmd->bnd", adj_plus, g3d,
                            preferred_element_type=jnp.float32)
            # One weight matmul on the flattened block, fused bias.
            h = jnp.dot(ax.reshape(bn, -1), w,
                        preferred_element_type=jnp.float32) + b2
            g2d = jnp.maximum(h * inv_denom, 0.0)                # ReLU

            # Accumulate the final Linear directly (no concat, static slices).
            contrib = jnp.dot(g2d, wout_ref[pl.ds(l * mem, mem), :],
                              preferred_element_type=jnp.float32)
            acc = contrib if acc is None else acc + contrib

            g3d = g2d.reshape(b_blk, n, mem)   # gcn_drop is identity (eval)

        out = acc + bout_ref[...]
        out_ref[...] = out.reshape(b_blk, n, mem).astype(out_ref.dtype)

    return kernel


def gcn_forward(inputs, adj, layer_ws, layer_bs, w_out, b_out,
                *, batch_block=None):
    """inputs: (B, N, D_in) f32, adj: (B, N, N) f32.

    layer_ws[l]: (in_l, mem)   -- torch Linear weight transposed
    layer_bs[l]: (1, mem)
    w_out: (num_layers * mem, mem), b_out: (1, mem)

    Returns (gcn_outputs (B, N, mem) f32, mask (B, N, 1) bool).
    """
    B, N, D_in = inputs.shape
    num_layers = len(layer_ws)
    mem = layer_ws[0].shape[1]

    if batch_block is None:
        # Batch a block per grid step, but keep >= 2 grid blocks when possible
        # so both v7x TensorCores get work.
        batch_block = B // 2 if (B >= 2 and B % 2 == 0) else 1
    assert B % batch_block == 0
    grid_b = B // batch_block

    # Cheap prep better done as fused XLA ops than inside the kernel.
    adj_plus = adj + jnp.eye(N, dtype=adj.dtype)[None]
    mask = ((adj.sum(2) + adj.sum(1)) == 0)[..., None]

    kernel = _make_gcn_kernel(num_layers, batch_block, N, mem)

    def full_2d_spec(shape):
        return pl.BlockSpec(shape, lambda b: (0, 0))

    in_specs = [
        pl.BlockSpec((batch_block, N, N), lambda b: (b, 0, 0)),      # adj + I
        pl.BlockSpec((batch_block, N, D_in), lambda b: (b, 0, 0)),   # inputs
    ]
    operands = [adj_plus, inputs]
    for w, bias in zip(layer_ws, layer_bs):
        in_specs.append(full_2d_spec(w.shape))
        operands.append(w)
        in_specs.append(full_2d_spec(bias.shape))
        operands.append(bias * 2.0)          # doubled bias, precomputed
    in_specs.append(full_2d_spec(w_out.shape))
    operands.append(w_out)
    in_specs.append(full_2d_spec(b_out.shape))
    operands.append(b_out)

    out = pl.pallas_call(
        kernel,
        out_shape=jax.ShapeDtypeStruct((B, N, mem), jnp.float32),
        grid_spec=pltpu.PrefetchScalarGridSpec(
            num_scalar_prefetch=0,
            grid=(grid_b,),
            in_specs=in_specs,
            out_specs=pl.BlockSpec((batch_block, N, mem),
                                   lambda b: (b, 0, 0)),
        ),
        compiler_params=pltpu.CompilerParams(
            dimension_semantics=("parallel",)),
    )(*operands)

    return out, mask


def gcn_reference(inputs, adj, layer_ws, layer_bs, w_out, b_out):
    """Pure-JAX reference mirroring the PyTorch forward (use_rnn=False, eval)."""
    denom = adj.sum(2)[..., None] + 1.0
    mask = ((adj.sum(2) + adj.sum(1)) == 0)[..., None]
    gcn_inputs = inputs
    gcn_outputs = None
    for w, b in zip(layer_ws, layer_bs):
        ax = jnp.einsum("bnm,bmd->bnd", adj, gcn_inputs)
        axw = ax @ w + b
        axw = axw + (gcn_inputs @ w + b)
        axw = axw / denom
        g = jax.nn.relu(axw)
        gcn_outputs = g if gcn_outputs is None else jnp.concatenate(
            [gcn_outputs, g], axis=2)
        gcn_inputs = g
    gcn_outputs = gcn_outputs @ w_out + b_out
    return gcn_outputs, mask


if __name__ == "__main__":
    # Module config: GCN(in_dim=32, use_rnn=False, rnn_hidden=16, rnn_layers=1,
    #                    dropout=0.0, num_layers=2)  ->  mem_dim = 32
    B, N = 4, 8
    in_dim = 32
    rnn_hidden = 16
    mem_dim = rnn_hidden * 2
    num_layers = 2

    key = jax.random.PRNGKey(0)
    keys = jax.random.split(key, 4 + 2 * num_layers)

    inputs = jax.random.normal(keys[0], (B, N, in_dim), dtype=jnp.float32)
    # Binary adjacency with some zero rows/cols so the mask path is exercised.
    adj = (jax.random.uniform(keys[1], (B, N, N)) > 0.6).astype(jnp.float32)
    adj = adj.at[:, N - 1, :].set(0.0).at[:, :, N - 1].set(0.0)

    # Deterministic "Linear"-style params. Stored pre-transposed: (in, out).
    layer_ws, layer_bs = [], []
    for l in range(num_layers):
        d_in = in_dim if l == 0 else mem_dim
        bound = 1.0 / np.sqrt(d_in)
        layer_ws.append(jax.random.uniform(
            keys[2 + 2 * l], (d_in, mem_dim), jnp.float32, -bound, bound))
        layer_bs.append(jax.random.uniform(
            keys[3 + 2 * l], (1, mem_dim), jnp.float32, -bound, bound))
    bound = 1.0 / np.sqrt(mem_dim * num_layers)
    w_out = jax.random.uniform(
        keys[-2], (mem_dim * num_layers, mem_dim), jnp.float32, -bound, bound)
    b_out = jax.random.uniform(
        keys[-1], (1, mem_dim), jnp.float32, -bound, bound)

    out, mask = gcn_forward(inputs, adj, layer_ws, layer_bs, w_out, b_out)
    jax.block_until_ready(out)
    jax.block_until_ready(mask)

    ref_out, ref_mask = gcn_reference(inputs, adj, layer_ws, layer_bs,
                                      w_out, b_out)
    np.testing.assert_allclose(np.asarray(out), np.asarray(ref_out),
                               rtol=1e-5, atol=1e-5)
    np.testing.assert_array_equal(np.asarray(mask), np.asarray(ref_mask))

    print("KERNEL_OK")
</pallas_src>

<mosaic_0001>
module attributes {stable_mosaic.version = 11 : i64} {
  func.func @kernel(%arg0: i32, %arg1: memref<2x8x8xf32, #tpu.memory_space<vmem>>, %arg2: memref<2x8x32xf32, #tpu.memory_space<vmem>>, %arg3: memref<32x32xf32, #tpu.memory_space<vmem>>, %arg4: memref<1x32xf32, #tpu.memory_space<vmem>>, %arg5: memref<32x32xf32, #tpu.memory_space<vmem>>, %arg6: memref<1x32xf32, #tpu.memory_space<vmem>>, %arg7: memref<64x32xf32, #tpu.memory_space<vmem>>, %arg8: memref<1x32xf32, #tpu.memory_space<vmem>>, %arg9: memref<2x8x32xf32, #tpu.memory_space<vmem>>) attributes {dimension_semantics = [#tpu.dimension_semantics<parallel>], iteration_bounds = array<i64: 2>, scalar_prefetch = 0 : i64, scratch_operands = 0 : i64, tpu.core_type = #tpu.core_type<tc>, window_params = [{transform_indices = @transform_0, window_bounds = array<i64: 2, 8, 8>}, {transform_indices = @transform_1, window_bounds = array<i64: 2, 8, 32>}, {pipeline_mode = #tpu.pipeline_mode<synchronous>, transform_indices = @transform_2, window_bounds = array<i64: 32, 32>}, {pipeline_mode = #tpu.pipeline_mode<synchronous>, transform_indices = @transform_3, window_bounds = array<i64: 1, 32>}, {pipeline_mode = #tpu.pipeline_mode<synchronous>, transform_indices = @transform_4, window_bounds = array<i64: 32, 32>}, {pipeline_mode = #tpu.pipeline_mode<synchronous>, transform_indices = @transform_5, window_bounds = array<i64: 1, 32>}, {pipeline_mode = #tpu.pipeline_mode<synchronous>, transform_indices = @transform_6, window_bounds = array<i64: 64, 32>}, {pipeline_mode = #tpu.pipeline_mode<synchronous>, transform_indices = @transform_7, window_bounds = array<i64: 1, 32>}, {transform_indices = @transform_8, window_bounds = array<i64: 2, 8, 32>}]} {
    %c0 = arith.constant 0 : index
    %c0_0 = arith.constant 0 : index
    %c0_1 = arith.constant 0 : index
    %0 = vector.load %arg1[%c0, %c0_0, %c0_1] : memref<2x8x8xf32, #tpu.memory_space<vmem>>, vector<2x8x8xf32>
    %c0_2 = arith.constant 0 : index
    %c0_3 = arith.constant 0 : index
    %c0_4 = arith.constant 0 : index
    %1 = vector.load %arg2[%c0_2, %c0_3, %c0_4] : memref<2x8x32xf32, #tpu.memory_space<vmem>>, vector<2x8x32xf32>
    %cst = arith.constant dense<0.000000e+00> : vector<2x8xf32>
    %2 = vector.multi_reduction <add>, %0, %cst [2] : vector<2x8x8xf32> to vector<2x8xf32>
    %3 = vector.shape_cast %2 : vector<2x8xf32> to vector<2x8x1xf32>
    %4 = vector.shape_cast %3 : vector<2x8x1xf32> to vector<16x1xf32>
    %5 = tpu.reciprocal %4 : vector<16x1xf32> -> vector<16x1xf32>
    %c0_5 = arith.constant 0 : index
    %c0_6 = arith.constant 0 : index
    %6 = vector.load %arg3[%c0_5, %c0_6] : memref<32x32xf32, #tpu.memory_space<vmem>>, vector<32x32xf32>
    %c0_7 = arith.constant 0 : index
    %c0_8 = arith.constant 0 : index
    %7 = vector.load %arg4[%c0_7, %c0_8] : memref<1x32xf32, #tpu.memory_space<vmem>>, vector<1x32xf32>
    "tpu.trace_start"() <{level = 10 : i32, message = "bnm,bmd->bnd"}> : () -> ()
    %cst_9 = arith.constant dense<0.000000e+00> : vector<2x8x32xf32>
    %8 = tpu.matmul %0, %1, %cst_9 {dimension_numbers = #tpu.dot_dimension_numbers<[2], [1], [1], [2], [0, 0, 0, 1, 1, 2], [0], [0]>} : vector<2x8x8xf32>, vector<2x8x32xf32>, vector<2x8x32xf32> -> vector<2x8x32xf32>
    "tpu.trace_stop"() : () -> ()
    %9 = vector.shape_cast %8 : vector<2x8x32xf32> to vector<16x32xf32>
    %cst_10 = arith.constant dense<0.000000e+00> : vector<16x32xf32>
    %10 = tpu.matmul %9, %6, %cst_10 {dimension_numbers = #tpu.dot_dimension_numbers<[1], [0], [0], [1], [0, 0, 1, 1], [], []>} : vector<16x32xf32>, vector<32x32xf32>, vector<16x32xf32> -> vector<16x32xf32>
    %11 = vector.broadcast %7 : vector<1x32xf32> to vector<16x32xf32>
    %12 = arith.addf %10, %11 : vector<16x32xf32>
    %13 = vector.broadcast %5 : vector<16x1xf32> to vector<16x32xf32>
    %14 = arith.mulf %12, %13 : vector<16x32xf32>
    %cst_11 = arith.constant 0.000000e+00 : f32
    %15 = vector.broadcast %cst_11 : f32 to vector<16x32xf32>
    %16 = arith.maximumf %14, %15 : vector<16x32xf32>
    %c0_12 = arith.constant 0 : index
    %c0_13 = arith.constant 0 : index
    %17 = vector.load %arg7[%c0_12, %c0_13] : memref<64x32xf32, #tpu.memory_space<vmem>>, vector<32x32xf32>
    %cst_14 = arith.constant dense<0.000000e+00> : vector<16x32xf32>
    %18 = tpu.matmul %16, %17, %cst_14 {dimension_numbers = #tpu.dot_dimension_numbers<[1], [0], [0], [1], [0, 0, 1, 1], [], []>} : vector<16x32xf32>, vector<32x32xf32>, vector<16x32xf32> -> vector<16x32xf32>
    %19 = vector.shape_cast %16 : vector<16x32xf32> to vector<2x8x32xf32>
    %c0_15 = arith.constant 0 : index
    %c0_16 = arith.constant 0 : index
    %20 = vector.load %arg5[%c0_15, %c0_16] : memref<32x32xf32, #tpu.memory_space<vmem>>, vector<32x32xf32>
    %c0_17 = arith.constant 0 : index
    %c0_18 = arith.constant 0 : index
    %21 = vector.load %arg6[%c0_17, %c0_18] : memref<1x32xf32, #tpu.memory_space<vmem>>, vector<1x32xf32>
    "tpu.trace_start"() <{level = 10 : i32, message = "bnm,bmd->bnd"}> : () -> ()
    %cst_19 = arith.constant dense<0.000000e+00> : vector<2x8x32xf32>
    %22 = tpu.matmul %0, %19, %cst_19 {dimension_numbers = #tpu.dot_dimension_numbers<[2], [1], [1], [2], [0, 0, 0, 1, 1, 2], [0], [0]>} : vector<2x8x8xf32>, vector<2x8x32xf32>, vector<2x8x32xf32> -> vector<2x8x32xf32>
    "tpu.trace_stop"() : () -> ()
    %23 = vector.shape_cast %22 : vector<2x8x32xf32> to vector<16x32xf32>
    %cst_20 = arith.constant dense<0.000000e+00> : vector<16x32xf32>
    %24 = tpu.matmul %23, %20, %cst_20 {dimension_numbers = #tpu.dot_dimension_numbers<[1], [0], [0], [1], [0, 0, 1, 1], [], []>} : vector<16x32xf32>, vector<32x32xf32>, vector<16x32xf32> -> vector<16x32xf32>
    %25 = vector.broadcast %21 : vector<1x32xf32> to vector<16x32xf32>
    %26 = arith.addf %24, %25 : vector<16x32xf32>
    %27 = vector.broadcast %5 : vector<16x1xf32> to vector<16x32xf32>
    %28 = arith.mulf %26, %27 : vector<16x32xf32>
    %cst_21 = arith.constant 0.000000e+00 : f32
    %29 = vector.broadcast %cst_21 : f32 to vector<16x32xf32>
    %30 = arith.maximumf %28, %29 : vector<16x32xf32>
    %c32 = arith.constant 32 : index
    %c0_22 = arith.constant 0 : index
    %31 = vector.load %arg7[%c32, %c0_22] : memref<64x32xf32, #tpu.memory_space<vmem>>, vector<32x32xf32>
    %cst_23 = arith.constant dense<0.000000e+00> : vector<16x32xf32>
    %32 = tpu.matmul %30, %31, %cst_23 {dimension_numbers = #tpu.dot_dimension_numbers<[1], [0], [0], [1], [0, 0, 1, 1], [], []>} : vector<16x32xf32>, vector<32x32xf32>, vector<16x32xf32> -> vector<16x32xf32>
    %33 = arith.addf %18, %32 : vector<16x32xf32>
    %c0_24 = arith.constant 0 : index
    %c0_25 = arith.constant 0 : index
    %34 = vector.load %arg8[%c0_24, %c0_25] : memref<1x32xf32, #tpu.memory_space<vmem>>, vector<1x32xf32>
    %35 = vector.broadcast %34 : vector<1x32xf32> to vector<16x32xf32>
    %36 = arith.addf %33, %35 : vector<16x32xf32>
    %37 = vector.shape_cast %36 : vector<16x32xf32> to vector<2x8x32xf32>
    %c0_26 = arith.constant 0 : index
    %c0_27 = arith.constant 0 : index
    %c0_28 = arith.constant 0 : index
    %38 = vector.load %arg9[%c0_26, %c0_27, %c0_28] : memref<2x8x32xf32, #tpu.memory_space<vmem>>, vector<2x8x32xf32>
    tpu.vector_store %arg9[%c0_26, %c0_27, %c0_28], %37 {strides = array<i32>} : memref<2x8x32xf32, #tpu.memory_space<vmem>>, vector<2x8x32xf32>,
    return
  }
  func.func @transform_0(%arg0: i32) -> (i32, i32, i32) {
    %c0_i32 = arith.constant 0 : i32
    %c0_i32_0 = arith.constant 0 : i32
    %c0_i32_1 = arith.constant 0 : i32
    return %arg0, %c0_i32, %c0_i32_0 : i32, i32, i32
  }
  func.func @transform_1(%arg0: i32) -> (i32, i32, i32) {
    %c0_i32 = arith.constant 0 : i32
    %c0_i32_0 = arith.constant 0 : i32
    %c0_i32_1 = arith.constant 0 : i32
    return %arg0, %c0_i32, %c0_i32_0 : i32, i32, i32
  }
  func.func @transform_2(%arg0: i32) -> (i32, i32) {
    %c0_i32 = arith.constant 0 : i32
    %c0_i32_0 = arith.constant 0 : i32
    %c0_i32_1 = arith.constant 0 : i32
    return %c0_i32, %c0_i32_0 : i32, i32
  }
  func.func @transform_3(%arg0: i32) -> (i32, i32) {
    %c0_i32 = arith.constant 0 : i32
    %c0_i32_0 = arith.constant 0 : i32
    %c0_i32_1 = arith.constant 0 : i32
    return %c0_i32, %c0_i32_0 : i32, i32
  }
  func.func @transform_4(%arg0: i32) -> (i32, i32) {
    %c0_i32 = arith.constant 0 : i32
    %c0_i32_0 = arith.constant 0 : i32
    %c0_i32_1 = arith.constant 0 : i32
    return %c0_i32, %c0_i32_0 : i32, i32
  }
  func.func @transform_5(%arg0: i32) -> (i32, i32) {
    %c0_i32 = arith.constant 0 : i32
    %c0_i32_0 = arith.constant 0 : i32
    %c0_i32_1 = arith.constant 0 : i32
    return %c0_i32, %c0_i32_0 : i32, i32
  }
  func.func @transform_6(%arg0: i32) -> (i32, i32) {
    %c0_i32 = arith.constant 0 : i32
    %c0_i32_0 = arith.constant 0 : i32
    %c0_i32_1 = arith.constant 0 : i32
    return %c0_i32, %c0_i32_0 : i32, i32
  }
  func.func @transform_7(%arg0: i32) -> (i32, i32) {
    %c0_i32 = arith.constant 0 : i32
    %c0_i32_0 = arith.constant 0 : i32
    %c0_i32_1 = arith.constant 0 : i32
    return %c0_i32, %c0_i32_0 : i32, i32
  }
  func.func @transform_8(%arg0: i32) -> (i32, i32, i32) {
    %c0_i32 = arith.constant 0 : i32
    %c0_i32_0 = arith.constant 0 : i32
    %c0_i32_1 = arith.constant 0 : i32
    return %arg0, %c0_i32, %c0_i32_0 : i32, i32, i32
  }
}

</mosaic_0001>

<bundles_post_ra>
// kernel: tpu_custom_call.1
= control target key start
LH: loop header
LB: loop body
LE: loop exit
PB: predicated region body
PF: predicated region fallthrough
CT: control target
= control target key end

     0   :  { %13 = vsyncpa [#allocation3], 0  ;;  %s1645_s0 = inlined_call_operand.vmem [shape: f32[4,8,8], index: 0, kind: input, shape index: {}]   ;;  %s1646_s1 = inlined_call_operand.vmem [shape: f32[4,8,32], index: 1, kind: input, shape index: {}]   ;;  %s1647_s2 = inlined_call_operand.vmem [shape: f32[32,32], index: 2, kind: input, shape index: {}]   ;;  %s1648_s3 = inlined_call_operand.vmem [shape: f32[1,32], index: 3, kind: input, shape index: {}]   ;;  %s1649_s4 = inlined_call_operand.hbm [shape: f32[32,32], index: 4, kind: input, shape index: {}]   ;;  %s1650_s5 = inlined_call_operand.vmem [shape: f32[1,32], index: 5, kind: input, shape index: {}]   ;;  %s1651_s6 = inlined_call_operand.vmem [shape: f32[64,32], index: 6, kind: input, shape index: {}]   ;;  %s1652_s7 = inlined_call_operand.vmem [shape: f32[1,32], index: 7, kind: input, shape index: {}]   ;;  %s1653_s8 = inlined_call_operand.hbm [shape: f32[4,8,32], index: 8, kind: output, shape index: {}]  }
   0x1   :  { %14 = vsyncpa [#allocation4], 0 }
   0x2   :  { %16 = vsyncpa [#allocation4 + $0x1], 0  ;;  %s1450_s27 = smov 0   ;;  %s1452_s28 = smov 0  }
   0x3   :  { %s1454_s29 = smov 0   ;;  %s1456_s30 = smov 0  }
   0x4 LB: > { %s1471_s9 = sadd.s32 4294967295, %s1395_s30   ;;  %s1117_s10 = sadd.s32 4294967294, %s1395_s30   ;;  %s1395_s30 = sphi %s1456_s30, %s1661_s30   ;;  %s1391_s29 = sphi %s1454_s29, %s1660_s29   ;;  %s1387_s28 = sphi %s1452_s28, %s1659_s28   ;;  %s1383_s27 = sphi %s1450_s27, %s1658_s27  }
   0x5   : > { %s1475_s11 = sadd.s32 1, %s1395_s30   ;;  %s207_s12 = sadd.s32 1, %s1391_s29 }
   0x6   : > { %s204_s13 = ssub.s32 %s1395_s30, %s1475_s11  ;;  %p217_p0 = scmp.ne.s32.totalorder %s1391_s29, %s1387_s28 }
   0x7   : > { %p205_p1 = scmp.eq.s32.totalorder %s204_s13, 0  ;;  %p218_p2 = scmp.eq.s32.totalorder %s1471_s9, 1 }
   0x8   : > { %p223_p3 = scmp.ne.s32.totalorder %s1387_s28, %s1383_s27  ;;  %p224_p4 = scmp.eq.s32.totalorder %s1117_s10, 1 }
   0x9   : > { %s1486_s14 = scalar_select %p205_p1, %s1391_s29, %s207_s12  }
   0xa   : > { %p1488_p5 = por %p218_p2, %p217_p0  ;;  %p1492_p6 = por %p224_p4, %p223_p3 }
   0xb   : > { %p1118_p7 = scmp.ge.s32.totalorder %s1395_s30, 1  ;;  %p231_p8 = scmp.lt.s32.totalorder %s1395_s30, 3 }
   0xc   : > { %s1655_s16 = scalar_select %p1492_p6, 1, 0 }
   0xd   : > { %p1259_p9 = scmp.eq.s32.totalorder %s1471_s9, 0  ;;  %p1499_p10 = pnand %p1118_p7, %p231_p8 }
   0xe   : > { %s1397_s18 = smov [#allocation2]  }
   0xf   : > { %s249_s19 = sshll.u32 %s1397_s18, 4  ;;  %p1251_p11 = pneg %p1499_p10  ;;  %s250_s19 = int_to_ptr.vmem [resolvable:$true] %s249_s19 }
  0x10   : > { %s1316_s20 = scalar_lea.vmem %s250_s19, 512  ;;  %p1324_p3 = scmp.lt.s32.totalorder %s250_s19, %s250_s19 }
  0x11   : > { %p1252_p12 = pnand %p1259_p9, %p1251_p11  ;;  %p1317_p0 = scmp.ne.s32.totalorder %s250_s19, %s1316_s20 }
  0x12   : > { %p1325_p4 = scmp.lt.s32.totalorder %s1316_s20, %s1316_s20 }
  0x13   : > { %p1307_p13 = pneg %p1252_p12 }
  0x14   : > { %p1326_p6 = por %p1325_p4, %p1324_p3 }
  0x15   : > { %p1319_p1 = pnand %p1317_p0, %p1307_p13 }
  0x17   : > { %p1320_p2 = pneg %p1319_p1 }
  0x19   : > { %p1327_p7 = pnand %p1326_p6, %p1320_p2 }
  0x1b   : > { %1330 = shalt.err (!%p1327_p7)
}
  0x1c   : > { %s1398_s21 = smov 128   ;;  %s1399_s22 = smov 8  }
  0x1d   : > { %1254 = dma.hbm_to_vmem [thread:$0]  (!%p1252_p12), %s1649_s4, 512, %s250_s19, [#allocation3], %s1398_s21, %s1398_s21, %s1399_s22  }
  0x1e   : > { %292 = sbr.rel (%p1499_p10) target bundleno = 1055 (0x41f), region = 52 }
  0x23   : > { %1374 = dma.done.wait (%p1259_p9), [#allocation3], 512  }
  0x24   : > { %1376 = vsyncadd (%p1259_p9), [#allocation3], 4294966784  ;;  %s1124_s25 = sshll.u32 %s1471_s9, 1  ;;  %v1400_v0 = vmov 0.0   ;;  %vm1401_vm0 = vmmov 0   ;;  %vm348_vm1 = vcmask 64512  }
  0x25   : > { %1181 = vmatprep.subr.mxu1 %v1400_v0  ;;  %p332_p6 = scmp.lt.s32.totalorder %s1124_s25, 3  ;;  %1183 = vmatprep.mubr.msk.f32.mxu1 %vm1401_vm0, %v1400_v0  ;;  %v360_v4 = vld [vmem:[%s1647_s2 + $0x18] sm:$0xff]  ;;  %v359_v6 = vld [vmem:[%s1647_s2 + $0x10] sm:$0xff]  ;;  %v358_v7 = vld [vmem:[%s1647_s2 + $0x8] sm:$0xff]  ;;  %vm514_vm2 = vcmask 261120   ;;  %s328_s22 = sand.u32 1, %s1387_s28  }
  0x26   : > { %1191 = vmatprep.subr.mxu0 %v360_v4  ;;  %v357_v8 = vld [vmem:[%s1647_s2] sm:$0xff]  ;;  %v607_v15 = vld [vmem:[#allocation2 + $0x18] sm:$0xff]  ;;  %v606_v16 = vld [vmem:[#allocation2 + $0x10] sm:$0xff]  ;;  %s1123_s23 = sshll.u32 %s328_s22, 4  ;;  %s1402_s20 = smov [#allocation5]  }
  0x27   : > { %s1663_s25 = smov (!%p332_p6, %s1124_s25), 3  ;;  %1192 = vmatpush3.msra.mxu0 %v360_v4  ;;  %v1130_v19 = vld [vmem:[%s1648_s3] ss:$0 sm:$0xff]  ;;  %v605_v30 = vld [vmem:[#allocation2 + $0x8] sm:$0xff]  ;;  %v603_v32 = vld [vmem:[%s1651_s6 + $0x18] sm:$0xff]  ;;  %s330_s10 = scalar_lea.vmem [#allocation5], %s1123_s23 }
  0x28   : > { %s1125_s26 = sshll.u32 %s1663_s25, 3  ;;  %1193 = vmatprep.subr.mxu0 %v359_v6  ;;  %v604_v31 = vld [vmem:[#allocation2] sm:$0xff]  ;;  %v602_v36 = vld [vmem:[%s1651_s6 + $0x10] sm:$0xff]  ;;  %v601_v38 = vld [vmem:[%s1651_s6 + $0x8] sm:$0xff]  ;;  %s1031_s12 = sshll.u32 %s330_s10, 4  ;;  %s1601_s12 = int_to_ptr.vmem [resolvable:$true] %s1031_s12 }
  0x29   : > { %s335_s13 = scalar_lea.vmem %s1645_s0, %s1125_s26  ;;  %s341_s19 = scalar_lea.vmem %s1646_s1, %s1125_s26  ;;  %1194 = vmatpush3.msra.mxu0 %v359_v6  ;;  %v600_v39 = vld [vmem:[%s1651_s6] sm:$0xff]  ;;  %v843_v40 = vld [vmem:[%s1651_s6 + $0x38] sm:$0xff]  ;;  %v842_v41 = vld [vmem:[%s1651_s6 + $0x30] sm:$0xff] }
  0x2a   : > { %v346_v1 = vld [vmem:[%s341_s19] sm:$0xff]  ;;  %v347_v2 = vld [vmem:[%s341_s19 + $0x8] sm:$0xff]  ;;  %1195 = vmatprep.subr.mxu0 %v358_v7  ;;  %s1148_s26 = sshll.u32 %s1471_s9, 8  ;;  %s1605_s9 = scalar_lea.sflag [#allocation4], %s328_s22 }
  0x2b   : > { %1182 = vmatpush3.msra.mxu1 %v346_v1  ;;  %v344_v3 = vld [vmem:[%s335_s13] sm:$0xff]  ;;  %v345_v5 = vld [vmem:[%s335_s13 + $0x8] sm:$0xff]  ;;  %1196 = vmatpush3.msra.mxu0 %v358_v7  ;;  %s1599_s18 = scalar_lea.hbm %s1653_s8, %s1148_s26  ;;  %s1331_s19 = scalar_lea.vmem %s1601_s12, 256 }
  0x2c   : > { %1184 = vmatmul.mubr.msk.f32.vlgmr.msra.gmra.mxu1 %vm348_vm1, %v344_v3  ;;  %1186 = vmatprep.subr.mxu1 %v1400_v0  ;;  %v349_v9 = vsel %vm348_vm1, %v344_v3, 0.0  ;;  %v352_v10 = vsel %vm348_vm1, %v345_v5, 0.0  ;;  %v841_v42 = vld [vmem:[%s1651_s6 + $0x28] sm:$0xff]  ;;  %v840_v43 = vld [vmem:[%s1651_s6 + $0x20] sm:$0xff]  ;;  %p1332_p8 = scmp.ne.s32.totalorder %s1601_s12, %s1331_s19  ;;  %s1335_s21 = sshll.u32 %s1402_s20, 4  ;;  %s1336_s21 = int_to_ptr.vmem [resolvable:$false] %s1335_s21 }
  0x2d   : > { %1187 = vmatpush3.msra.mxu1 %v347_v2  ;;  %1188 = vmatprep.mubr.msk.f32.mxu1 %vm1401_vm0, %v1400_v0  ;;  %v1135_v44 = vld [vmem:[%s1650_s5] ss:$0 sm:$0xff]  ;;  %s1337_s23 = scalar_lea.vmem %s1336_s21, 512  ;;  %p1338_p11 = scmp.lt.s32.totalorder %s1601_s12, %s1336_s21 }
  0x2e   : > { %1202 = vmatprep.subr.mxu1 %v1400_v0  ;;  %1197 = vmatprep.subr.mxu0 %v357_v8  ;;  %v1142_v55 = vld [vmem:[%s1652_s7] ss:$0 sm:$0xff]  ;;  %p1333_p9 = pnand %p1332_p8, %p1488_p5  ;;  %p1339_p12 = scmp.lt.s32.totalorder %s1337_s23, %s1331_s19 }
  0x2f   : > { %1198 = vmatpush3.msra.mxu0 %v357_v8  ;;  %350 = vadd.xlane.f32.xlu0 %v349_v9 }
  0x30   : > { %1189 = vmatmul.mubr.msk.f32.vlgmr.msra.gmra.mxu1 %vm348_vm1, %v345_v5  ;;  %1212 = vmatprep.subr.mxu0 %v607_v15  ;;  %p1334_p10 = pneg %p1333_p9  ;;  %p1340_p13 = por %p1339_p12, %p1338_p11 }
  0x31   : > { %1204 = vmatprep.mubr.msk.f32.mxu1 %vm1401_vm0, %v1400_v0 }
  0x32   : > { %p1341_p0 = pnand %p1340_p13, %p1334_p10 }
  0x33   : > { %353 = vadd.xlane.f32.xlu0 %v352_v10 }
  0xb8   : > { %v351_v17 = vpop.xlane.xlu0 %350 }
  0xb9   : > { %1301 = vrcp.f32 %v351_v17 }
  0xbc   : > { %v354_v18 = vpop.xlane.xlu0 %353 }
  0xbd   : > { %1303 = vrcp.f32 %v354_v18 }
  0xc6   : > { %v1302_v21 = vpop.eup %1301 }
  0xca   : > { %v1304_v23 = vpop.eup %1303 }
  0xec   : > { %v431_v11 = vpop.f32.mrf.mxu1 }
  0xed   : > { %1199 = vmatprep.mubr.msk.f32.mxu0 %vm514_vm2, %v431_v11 }
  0xee   : > { %v1185_v12 = vpop.f32.mrf.mxu1 }
  0xf0   : > { %v504_v13 = vpop.f32.mrf.mxu1 }
  0xf1   : > { %1200 = vmatmul.mubr.msk.f32.vlgmr.msra.gmra.mxu0 %vm514_vm2, %v504_v13 }
  0xf2   : > { %v1190_v14 = vpop.f32.mrf.mxu1  ;;  %1213 = vmatpush3.msra.mxu0 %v607_v15 }
  0xf3   : > { %1214 = vmatprep.subr.mxu0 %v606_v16 }
  0xf4   : > { %1215 = vmatpush3.msra.mxu0 %v606_v16 }
  0xf5   : > { %1216 = vmatprep.subr.mxu0 %v605_v30 }
  0xf6   : > { %1217 = vmatpush3.msra.mxu0 %v605_v30 }
  0xf7   : > { %1218 = vmatprep.subr.mxu0 %v604_v31 }
  0xf8   : > { %1219 = vmatpush3.msra.mxu0 %v604_v31 }
  0xf9   : > { %1234 = vmatprep.subr.mxu0 %v603_v32 }
 0x1b1   : > { %v1201_v20 = vpop.f32.mrf.mxu0 }
 0x1b2   : > { %v593_v22 = vadd.f32 %v1201_v20, %v1130_v19 }
 0x1b3   : > { %v587_v24 = vpop.f32.mrf.mxu0 }
 0x1b4   : > { %v588_v25 = vadd.f32 %v1130_v19, %v587_v24  ;;  %v597_v26 = vmul.f32 %v1304_v23, %v593_v22 }
 0x1b6   : > { %v596_v27 = vmul.f32 %v1302_v21, %v588_v25  ;;  %v599_v29 = vmax.f32 %v597_v26, 0.0 }
 0x1b8   : > { %v598_v28 = vmax.f32 %v596_v27, 0.0 }
 0x1ba   : > { %1203 = vmatpush3.msra.mxu1 %v598_v28 }
 0x1bb   : > { %1205 = vmatmul.mubr.msk.f32.vlgmr.msra.gmra.mxu1 %vm348_vm1, %v344_v3  ;;  %1207 = vmatprep.subr.mxu1 %v1400_v0 }
 0x1bc   : > { %1208 = vmatpush3.msra.mxu1 %v599_v29  ;;  %1209 = vmatprep.mubr.msk.f32.mxu1 %vm1401_vm0, %v1400_v0 }
 0x1bd   : > { %1223 = vmatprep.subr.mxu1 %v843_v40 }
 0x1bf   : > { %1210 = vmatmul.mubr.msk.f32.vlgmr.msra.gmra.mxu1 %vm348_vm1, %v345_v5 }
 0x1c0   : > { %1224 = vmatpush3.msra.mxu1 %v843_v40 }
 0x1c1   : > { %1225 = vmatprep.subr.mxu1 %v842_v41 }
 0x1c2   : > { %1226 = vmatpush3.msra.mxu1 %v842_v41 }
 0x1c3   : > { %1227 = vmatprep.subr.mxu1 %v841_v42 }
 0x1c4   : > { %1228 = vmatpush3.msra.mxu1 %v841_v42 }
 0x1c5   : > { %1229 = vmatprep.subr.mxu1 %v840_v43 }
 0x1c6   : > { %1230 = vmatpush3.msra.mxu1 %v840_v43 }
 0x27b   : > { %v675_v33 = vpop.f32.mrf.mxu1 }
 0x27c   : > { %1220 = vmatprep.mubr.msk.f32.mxu0 %vm514_vm2, %v675_v33 }
 0x27d   : > { %v1206_v34 = vpop.f32.mrf.mxu1 }
 0x27f   : > { %v745_v35 = vpop.f32.mrf.mxu1 }
 0x280   : > { %1221 = vmatmul.mubr.msk.f32.vlgmr.msra.gmra.mxu0 %vm514_vm2, %v745_v35 }
 0x281   : > { %1235 = vmatpush3.msra.mxu0 %v603_v32  ;;  %1242 = vmatprep.mubr.msk.f32.mxu0 %vm514_vm2, %v598_v28  ;;  %v1211_v37 = vpop.f32.mrf.mxu1 }
 0x282   : > { %1236 = vmatprep.subr.mxu0 %v602_v36 }
 0x283   : > { %1237 = vmatpush3.msra.mxu0 %v602_v36 }
 0x284   : > { %1238 = vmatprep.subr.mxu0 %v601_v38 }
 0x285   : > { %1239 = vmatpush3.msra.mxu0 %v601_v38 }
 0x286   : > { %1240 = vmatprep.subr.mxu0 %v600_v39 }
 0x287   : > { %1241 = vmatpush3.msra.mxu0 %v600_v39 }
 0x288   : > { %1243 = vmatmul.mubr.msk.f32.vlgmr.msra.gmra.mxu0 %vm514_vm2, %v599_v29 }
 0x340   : > { %v1222_v45 = vpop.f32.mrf.mxu0 }
 0x341   : > { %v833_v46 = vadd.f32 %v1222_v45, %v1135_v44 }
 0x342   : > { %v827_v47 = vpop.f32.mrf.mxu0 }
 0x343   : > { %v828_v48 = vadd.f32 %v1135_v44, %v827_v47  ;;  %v837_v49 = vmul.f32 %v1304_v23, %v833_v46 }
 0x345   : > { %v836_v50 = vmul.f32 %v1302_v21, %v828_v48  ;;  %v839_v52 = vmax.f32 %v837_v49, 0.0 }
 0x347   : > { %v838_v51 = vmax.f32 %v836_v50, 0.0 }
 0x348   : > { %v1244_v53 = vpop.f32.mrf.mxu0 }
 0x349   : > { %1231 = vmatprep.mubr.msk.f32.mxu1 %vm514_vm2, %v838_v51 }
 0x34a   : > { %1232 = vmatmul.mubr.msk.f32.vlgmr.msra.gmra.mxu1 %vm514_vm2, %v839_v52  ;;  %v997_v57 = vpop.f32.mrf.mxu0 }
 0x40a   : > { %v1233_v54 = vpop.f32.mrf.mxu1 }
 0x40b   : > { %v1003_v56 = vadd.f32 %v1244_v53, %v1233_v54 }
 0x40c   : > { %v916_v58 = vpop.f32.mrf.mxu1 }
 0x40d   : > { %v1014_v59 = vadd.f32 %v1142_v55, %v1003_v56  ;;  %v998_v60 = vadd.f32 %v997_v57, %v916_v58 }
 0x40f   : > { %1016 = vst.msk [vmem:[%s330_s10 + $0x8] sm:$0xff] %vm514_vm2, %v1014_v59  ;;  %v1013_v61 = vadd.f32 %v1142_v55, %v998_v60 }
 0x411   : > { %1015 = vst.msk [vmem:[%s330_s10] sm:$0xff] %vm514_vm2, %v1013_v61 }
 0x412   : > { %1344 = shalt.err (!%p1341_p0)
}
 0x413   : > { %s1345_s22 = scalar_lea.hbm %s1599_s18, 256  ;;  %s1349_s26 = scalar_lea.hbm %s1653_s8, 512 }
 0x414   : > { %p1346_p1 = scmp.ne.s32.totalorder %s1599_s18, %s1345_s22  ;;  %p1350_p4 = scmp.lt.s32.totalorder %s1599_s18, %s1653_s8 }
 0x415   : > { %p1351_p7 = scmp.lt.s32.totalorder %s1349_s26, %s1345_s22 }
 0x416   : > { %p1347_p2 = pnand %p1346_p1, %p1488_p5 }
 0x417   : > { %p1352_p6 = por %p1351_p7, %p1350_p4 }
 0x418   : > { %p1348_p3 = pneg %p1347_p2 }
 0x41a   : > { %p1353_p8 = pnand %p1352_p6, %p1348_p3 }
 0x41c   : > { %1356 = shalt.err (!%p1353_p8)
}
 0x41d   : > { %s1403_s17 = smov 128   ;;  %s1404_s19 = smov 8  }
 0x41e   : > { %1249 = dma.vmem_to_hbm [thread:$0]  (%p1488_p5), %s1601_s12, 256, %s1599_s18, %s1605_s9, %s1403_s17, %s1403_s17, %s1404_s19  }
 0x41f PF: > { %p1261_p9 = scmp.ge.s32.totalorder %s1395_s30, 2  ;;  %s1046_s20 = sand.u32 1, %s1383_s27  }
 0x420   : > { %p1657_p10 = scmp.ne.s32.totalorder %s1655_s16, 0  ;;  %s1047_s21 = scalar_lea.sflag [#allocation4], %s1046_s20 }
 0x422   : > { %p1256_p11 = pnand %p1261_p9, %p1657_p10 }
 0x424   : > { %p1257_p12 = pneg %p1256_p11 }
 0x426   : > { %1378 = dma.done.wait (%p1257_p12), %s1047_s21, 256  }
 0x427   : > { %1380 = vsyncadd (%p1257_p12), %s1047_s21, 4294967040  ;;  %p19_p13 = scmp.ge.s32.totalorder %s1475_s11, 4   ;;  %s1658_s27 = smov %s1387_s28 }
 0x428   : > { %s1659_s28 = smov %s1391_s29  ;;  %s1660_s29 = smov %s1486_s14 }
 0x429   : > { %s1661_s30 = smov %s1475_s11  ;;  %21 = sbr.rel (!%p19_p13) target bundleno = 4 (0x4), region = 95 }
 0x42e   :  { %1052 = vsyncpa [#allocation3], 1 }
 0x42f   :  { %1054 = vsyncpa [#allocation3 + $0x1], 1 }
 0x430   :  { %1055 = vsyncpa [#allocation4], 1 }
 0x431   :  { %1057 = vsyncpa [#allocation4 + $0x1], 1 }

</bundles_post_ra>
